<compile_context>
chip_gen: v5e
topology: v5e:2x2
jax: 0.10.0
libtpu: 0.0.40
codegen_flags: <defaults>
</compile_context>

<pallas_src>
import functools

import numpy as np
import jax
import jax.numpy as jnp
from jax.experimental import pallas as pl
from jax.experimental.pallas import tpu as pltpu


# ---------------------------------------------------------------------------
# Fused kernel: 2x2 maxpool -> conv3x3+BN+ReLU -> conv3x3+BN+ReLU
# ---------------------------------------------------------------------------
def _down_fused_kernel(x_ref, w1_ref, b1_ref, w2_ref, b2_ref, o_ref,
                       *, Ho, Wo, Cin, Cmid):
    L1 = 2 * Wo * Cin          # lane width of one pooled row (sparse, stride 2*Cin)
    L2 = Wo * Cmid             # lane width of one conv1-output row
    NHo = o_ref.shape[0]       # N * Ho

    # ---- fused 2x2/2 max-pool (single lane-dense read) --------------------
    xv = x_ref[...]                                    # (N*Ho, 2*L1) f32
    hmax = jnp.maximum(xv[:, :L1], xv[:, L1:])         # max over H parity (128-aligned slices)
    shifted = jnp.concatenate([hmax[:, Cin:], hmax[:, :Cin]], axis=-1)
    pooled = jnp.maximum(hmax, shifted)                # max over W parity
    # Valid pooled value for (w, c) sits at lane w*2*Cin + c; the interleaved
    # garbage lanes are multiplied by exact-zero rows of the banded weights.
    p = pooled.astype(jnp.bfloat16)                    # single bf16 cast for the MXU

    # Row mask for H zero-padding (rows are ordered n-major, h-minor).
    h_idx = jax.lax.broadcasted_iota(jnp.int32, (NHo, 1), 0) % Ho

    # ---- conv1: one banded matmul (K = 3*L1) + folded BN + ReLU ------------
    zero1 = jnp.zeros((1, L1), jnp.bfloat16)
    up1 = jnp.concatenate([zero1, p[:-1, :]], axis=0)        # row h -> pooled row h-1
    dn1 = jnp.concatenate([p[1:, :], zero1], axis=0)         # row h -> pooled row h+1
    seg0 = jnp.where(h_idx == 0, jnp.zeros_like(up1), up1)   # zero pad at h == 0
    seg2 = jnp.where(h_idx == Ho - 1, jnp.zeros_like(dn1), dn1)
    lhs1 = jnp.concatenate([seg0, p, seg2], axis=-1)         # (N*Ho, 3*L1)
    acc1 = jnp.dot(lhs1, w1_ref[...], preferred_element_type=jnp.float32)
    h1 = jnp.maximum(acc1 + b1_ref[...], 0.0).astype(jnp.bfloat16)  # (N*Ho, L2)

    # ---- conv2: second banded matmul (K = 3*L2) + folded BN + ReLU ---------
    zero2 = jnp.zeros((1, L2), jnp.bfloat16)
    up2 = jnp.concatenate([zero2, h1[:-1, :]], axis=0)
    dn2 = jnp.concatenate([h1[1:, :], zero2], axis=0)
    seg0b = jnp.where(h_idx == 0, jnp.zeros_like(up2), up2)
    seg2b = jnp.where(h_idx == Ho - 1, jnp.zeros_like(dn2), dn2)
    lhs2 = jnp.concatenate([seg0b, h1, seg2b], axis=-1)      # (N*Ho, 3*L2)
    acc2 = jnp.dot(lhs2, w2_ref[...], preferred_element_type=jnp.float32)
    o_ref[...] = jnp.maximum(acc2 + b2_ref[...], 0.0).astype(o_ref.dtype)


# ---------------------------------------------------------------------------
# Wrapper
# ---------------------------------------------------------------------------
def down_forward(params, x):
    """Down(in_channels, out_channels) forward.  x: (N, Cin, H, W) NCHW f32."""
    w1, b1, w2, b2 = params["w1"], params["b1"], params["w2"], params["b2"]
    N, Cin, H, W = x.shape
    Ho, Wo = H // 2, W // 2                    # MaxPool2d(2): floor
    L1 = 2 * Wo * Cin
    Cmid = b1.shape[1] // Wo
    Cout = b2.shape[1] // Wo
    assert w1.shape == (3 * L1, Wo * Cmid) and w2.shape == (3 * Wo * Cmid, Wo * Cout)

    # NCHW -> NHWC -> (N*Ho, 2*L1): rows = (n, ho); lanes = [h-parity | w | w-parity | c]
    # (a free, contiguous reshape).  All kernel-side rows are lane-dense.
    # TODO(synk): keep activations in this layout across the whole U-Net to avoid
    #             the per-layer NCHW<->NHWC transpose (a full HBM pass at real sizes).
    xh = jnp.transpose(x, (0, 2, 3, 1))[:, :2 * Ho, :2 * Wo, :]
    xr = xh.reshape(N * Ho, 2 * L1)

    kernel = functools.partial(_down_fused_kernel, Ho=Ho, Wo=Wo, Cin=Cin, Cmid=Cmid)
    out = pl.pallas_call(
        kernel,
        out_shape=jax.ShapeDtypeStruct((N * Ho, Wo * Cout), jnp.float32),
        grid=(1,),                                         # whole batch in one step (M = N*Ho)
        in_specs=[
            pl.BlockSpec((N * Ho, 2 * L1), lambda i: (0, 0)),
            pl.BlockSpec((3 * L1, Wo * Cmid), lambda i: (0, 0)),        # resident banded W1
            pl.BlockSpec((1, Wo * Cmid), lambda i: (0, 0)),             # tiled bias1 (f32)
            pl.BlockSpec((3 * Wo * Cmid, Wo * Cout), lambda i: (0, 0)),  # resident banded W2
            pl.BlockSpec((1, Wo * Cout), lambda i: (0, 0)),             # tiled bias2 (f32)
        ],
        out_specs=pl.BlockSpec((N * Ho, Wo * Cout), lambda i: (0, 0)),  # lane-dense output
        compiler_params=pltpu.CompilerParams(
            dimension_semantics=("arbitrary",),
            vmem_limit_bytes=32 * 1024 * 1024,
        ),
    )(xr, w1, b1, w2, b2)
    # TODO(synk): for realistic U-Net sizes, tile over (N*Ho) row-blocks with a 1-row
    #             halo instead of one whole-batch step (v7x only has 64 MiB VMEM).

    out = out.reshape(N, Ho, Wo, Cout)
    return jnp.transpose(out, (0, 3, 1, 2))                # back to NCHW, f32


# ---------------------------------------------------------------------------
# Parameter construction (deterministic, synthetic), eval-mode BN folding and
# banded-weight packing (kernel-specific layout; depends on Wo).
# ---------------------------------------------------------------------------
def _pack_banded(w_np, cin, cout, Wo, cin_stride):
    """(cout, cin, 3, 3) conv weights -> banded (3*Wo*cin_stride, Wo*cout) matrix.

    Row index   r = dy*Wo*cin_stride + wi*cin_stride + ci   (input column wi, channel ci)
    Column      q = w*cout + co                             (output column w, channel co)
    Entry       = W[co, ci, dy, wi - w + 1] when 0 <= wi - w + 1 < 3 and 0 <= wi < Wo,
                  zero otherwise (this encodes the conv's W zero-padding and also
                  zeroes the pooled map's interleaved garbage lanes when
                  cin_stride > cin).
    """
    L_in = Wo * cin_stride
    B = np.zeros((3, L_in, Wo * cout), np.float32)
    ci_idx = np.arange(cin)
    co_idx = np.arange(cout)
    for dy in range(3):
        for kx in range(3):
            tap = w_np[:, :, dy, kx].T                      # (cin, cout)
            for w in range(Wo):
                wi = w + kx - 1
                if 0 <= wi < Wo:
                    B[dy, wi * cin_stride + ci_idx[:, None],
                          w * cout + co_idx[None, :]] = tap
    return jnp.asarray(B.reshape(3 * L_in, Wo * cout), dtype=jnp.bfloat16)


def _make_conv_bn_params(key, cin, cout, Wo, cin_stride):
    """Conv2d(cin, cout, 3, padding=1) + BatchNorm2d(cout) folded (eval mode)."""
    k = jax.random.split(key, 6)
    w = jax.random.normal(k[0], (cout, cin, 3, 3), jnp.float32) / np.sqrt(9 * cin)
    b = 0.05 * jax.random.normal(k[1], (cout,), jnp.float32)
    gamma = 1.0 + 0.1 * jax.random.normal(k[2], (cout,), jnp.float32)
    beta = 0.1 * jax.random.normal(k[3], (cout,), jnp.float32)
    mean = 0.1 * jax.random.normal(k[4], (cout,), jnp.float32)
    var = 1.0 + 0.1 * jax.random.uniform(k[5], (cout,), jnp.float32)
    eps = 1e-5
    scale = gamma / jnp.sqrt(var + eps)
    w_f = w * scale[:, None, None, None]                   # folded conv weight (f32)
    b_f = (b - mean) * scale + beta
    w_bf = w_f.astype(jnp.bfloat16)                        # bf16 weights feed the MXU
    w_banded = _pack_banded(np.asarray(w_bf, dtype=np.float32), cin, cout, Wo, cin_stride)
    b_tiled = jnp.tile(b_f, Wo).reshape(1, Wo * cout)      # bias stays f32, tiled over w
    ref = {"w": w_bf.astype(jnp.float32), "b": b_f}        # reference uses same rounded W
    return w_banded, b_tiled, ref


def make_down_params(key, in_channels, out_channels, Wo, mid_channels=None):
    if mid_channels is None:
        mid_channels = out_channels                        # DoubleConv default
    k1, k2 = jax.random.split(key)
    w1, b1, ref1 = _make_conv_bn_params(k1, in_channels, mid_channels, Wo,
                                        cin_stride=2 * in_channels)
    w2, b2, ref2 = _make_conv_bn_params(k2, mid_channels, out_channels, Wo,
                                        cin_stride=mid_channels)
    params = {"w1": w1, "b1": b1, "w2": w2, "b2": b2}
    ref_params = {"w1": ref1["w"], "b1": ref1["b"], "w2": ref2["w"], "b2": ref2["b"]}
    return params, ref_params


# ---------------------------------------------------------------------------
# Pure-JAX reference (eval-mode folded BN, same bf16-rounded weights)
# ---------------------------------------------------------------------------
def down_reference(ref_params, x):
    def conv_bn_relu(h, w, b):
        y = jax.lax.conv_general_dilated(
            h, w, window_strides=(1, 1), padding=((1, 1), (1, 1)),
            dimension_numbers=("NCHW", "OIHW", "NCHW"),
            precision=jax.lax.Precision.HIGHEST)
        return jax.nn.relu(y + b[None, :, None, None])

    pooled = jax.lax.reduce_window(x, -jnp.inf, jax.lax.max,
                                   window_dimensions=(1, 1, 2, 2),
                                   window_strides=(1, 1, 2, 2), padding="VALID")
    h = conv_bn_relu(pooled, ref_params["w1"], ref_params["b1"])
    return conv_bn_relu(h, ref_params["w2"], ref_params["b2"])


if __name__ == "__main__":
    root = jax.random.PRNGKey(0)
    k_params, k_input = jax.random.split(root)

    N, IN_C, OUT_C, H, W = 2, 8, 16, 16, 16
    Ho, Wo = H // 2, W // 2
    params, ref_params = make_down_params(k_params, IN_C, OUT_C, Wo)
    x = jax.random.normal(k_input, (N, IN_C, H, W), jnp.float32)

    fwd = jax.jit(down_forward)
    out = fwd(params, x)
    jax.block_until_ready(out)

    assert out.shape == (N, OUT_C, Ho, Wo), out.shape
    assert bool(jnp.all(jnp.isfinite(out)))

    ref = down_reference(ref_params, x)
    max_err = float(jnp.max(jnp.abs(out - ref)))
    assert max_err < 1e-1, max_err                 # bf16 operands, f32 accumulation

    print("KERNEL_OK")
</pallas_src>

<mosaic_0001>
module attributes {stable_mosaic.version = 11 : i64} {
  func.func @_down_fused_kernel(%arg0: i32, %arg1: memref<16x256xf32, #tpu.memory_space<vmem>>, %arg2: memref<384x128xbf16, #tpu.memory_space<vmem>>, %arg3: memref<1x128xf32, #tpu.memory_space<vmem>>, %arg4: memref<384x128xbf16, #tpu.memory_space<vmem>>, %arg5: memref<1x128xf32, #tpu.memory_space<vmem>>, %arg6: memref<16x128xf32, #tpu.memory_space<vmem>>) attributes {dimension_semantics = [#tpu.dimension_semantics<arbitrary>], iteration_bounds = array<i64: 1>, scalar_prefetch = 0 : i64, scratch_operands = 0 : i64, tpu.core_type = #tpu.core_type<tc>, window_params = [{pipeline_mode = #tpu.pipeline_mode<synchronous>, transform_indices = @transform_0, window_bounds = array<i64: 16, 256>}, {pipeline_mode = #tpu.pipeline_mode<synchronous>, transform_indices = @transform_1, window_bounds = array<i64: 384, 128>}, {pipeline_mode = #tpu.pipeline_mode<synchronous>, transform_indices = @transform_2, window_bounds = array<i64: 1, 128>}, {pipeline_mode = #tpu.pipeline_mode<synchronous>, transform_indices = @transform_3, window_bounds = array<i64: 384, 128>}, {pipeline_mode = #tpu.pipeline_mode<synchronous>, transform_indices = @transform_4, window_bounds = array<i64: 1, 128>}, {pipeline_mode = #tpu.pipeline_mode<synchronous>, transform_indices = @transform_5, window_bounds = array<i64: 16, 128>}]} {
    %c0 = arith.constant 0 : index
    %c0_0 = arith.constant 0 : index
    %0 = vector.load %arg1[%c0, %c0_0] : memref<16x256xf32, #tpu.memory_space<vmem>>, vector<16x256xf32>
    %1 = vector.extract_strided_slice %0 {offsets = [0, 0], sizes = [16, 128], strides = [1, 1]} : vector<16x256xf32> to vector<16x128xf32>
    %2 = vector.extract_strided_slice %0 {offsets = [0, 128], sizes = [16, 128], strides = [1, 1]} : vector<16x256xf32> to vector<16x128xf32>
    %3 = arith.maximumf %1, %2 : vector<16x128xf32>
    %4 = vector.extract_strided_slice %3 {offsets = [0, 8], sizes = [16, 120], strides = [1, 1]} : vector<16x128xf32> to vector<16x120xf32>
    %5 = vector.extract_strided_slice %3 {offsets = [0, 0], sizes = [16, 8], strides = [1, 1]} : vector<16x128xf32> to vector<16x8xf32>
    %6 = tpu.concatenate %4, %5 in 1 : vector<16x120xf32>, vector<16x8xf32> -> vector<16x128xf32>
    %7 = arith.maximumf %3, %6 : vector<16x128xf32>
    %8 = arith.truncf %7 : vector<16x128xf32> to vector<16x128xbf16>
    %9 = tpu.iota {dimensions = array<i32: 0>} : vector<16x1xi32>
    %c8_i32 = arith.constant 8 : i32
    %c0_i32 = arith.constant 0 : i32
    %10 = arith.cmpi eq, %c8_i32, %c0_i32 : i32
    %c1_i32 = arith.constant 1 : i32
    %11 = arith.select %10, %c1_i32, %c8_i32 : i32
    %12 = vector.broadcast %11 : i32 to vector<16x1xi32>
    %13 = arith.remsi %9, %12 : vector<16x1xi32>
    %c0_i32_1 = arith.constant 0 : i32
    %14 = vector.broadcast %c0_i32_1 : i32 to vector<16x1xi32>
    %15 = arith.cmpi ne, %13, %14 : vector<16x1xi32>
    %c0_i32_2 = arith.constant 0 : i32
    %16 = vector.broadcast %c0_i32_2 : i32 to vector<16x1xi32>
    %17 = arith.cmpi slt, %13, %16 : vector<16x1xi32>
    %c0_i32_3 = arith.constant 0 : i32
    %18 = arith.cmpi slt, %11, %c0_i32_3 : i32
    %19 = vector.broadcast %18 : i1 to vector<16x1xi1>
    %20 = vector.broadcast %19 : vector<16x1xi1> to vector<16x1xi1>
    %21 = arith.xori %17, %20 : vector<16x1xi1>
    %22 = arith.andi %21, %15 : vector<16x1xi1>
    %23 = vector.broadcast %11 : i32 to vector<16x1xi32>
    %24 = arith.addi %13, %23 : vector<16x1xi32>
    %25 = arith.select %22, %24, %13 : vector<16x1xi1>, vector<16x1xi32>
    %cst = arith.constant 0.000000e+00 : bf16
    %26 = vector.broadcast %cst : bf16 to vector<1x128xbf16>
    %27 = vector.extract_strided_slice %8 {offsets = [0, 0], sizes = [15, 128], strides = [1, 1]} : vector<16x128xbf16> to vector<15x128xbf16>
    %28 = tpu.concatenate %26, %27 in 0 : vector<1x128xbf16>, vector<15x128xbf16> -> vector<16x128xbf16>
    %29 = vector.extract_strided_slice %8 {offsets = [1, 0], sizes = [15, 128], strides = [1, 1]} : vector<16x128xbf16> to vector<15x128xbf16>
    %30 = tpu.concatenate %29, %26 in 0 : vector<15x128xbf16>, vector<1x128xbf16> -> vector<16x128xbf16>
    %c0_i32_4 = arith.constant 0 : i32
    %31 = vector.broadcast %c0_i32_4 : i32 to vector<16x1xi32>
    %32 = arith.cmpi eq, %25, %31 : vector<16x1xi32>
    %cst_5 = arith.constant 0.000000e+00 : bf16
    %33 = vector.broadcast %cst_5 : bf16 to vector<16x128xbf16>
    %34 = vector.shape_cast %32 : vector<16x1xi1> to vector<16x1xi1>
    %35 = vector.broadcast %34 : vector<16x1xi1> to vector<16x128xi1>
    %36 = arith.select %35, %33, %28 : vector<16x128xi1>, vector<16x128xbf16>
    %c7_i32 = arith.constant 7 : i32
    %37 = vector.broadcast %c7_i32 : i32 to vector<16x1xi32>
    %38 = arith.cmpi eq, %25, %37 : vector<16x1xi32>
    %cst_6 = arith.constant 0.000000e+00 : bf16
    %39 = vector.broadcast %cst_6 : bf16 to vector<16x128xbf16>
    %40 = vector.shape_cast %38 : vector<16x1xi1> to vector<16x1xi1>
    %41 = vector.broadcast %40 : vector<16x1xi1> to vector<16x128xi1>
    %42 = arith.select %41, %39, %30 : vector<16x128xi1>, vector<16x128xbf16>
    %43 = tpu.concatenate %36, %8, %42 in 1 : vector<16x128xbf16>, vector<16x128xbf16>, vector<16x128xbf16> -> vector<16x384xbf16>
    %c0_7 = arith.constant 0 : index
    %c0_8 = arith.constant 0 : index
    %44 = vector.load %arg2[%c0_7, %c0_8] : memref<384x128xbf16, #tpu.memory_space<vmem>>, vector<384x128xbf16>
    %cst_9 = arith.constant dense<0.000000e+00> : vector<16x128xf32>
    %45 = tpu.matmul %43, %44, %cst_9 {dimension_numbers = #tpu.dot_dimension_numbers<[1], [0], [0], [1], [0, 0, 1, 1], [], []>} : vector<16x384xbf16>, vector<384x128xbf16>, vector<16x128xf32> -> vector<16x128xf32>
    %c0_10 = arith.constant 0 : index
    %c0_11 = arith.constant 0 : index
    %46 = vector.load %arg3[%c0_10, %c0_11] : memref<1x128xf32, #tpu.memory_space<vmem>>, vector<1x128xf32>
    %47 = vector.broadcast %46 : vector<1x128xf32> to vector<16x128xf32>
    %48 = arith.addf %45, %47 : vector<16x128xf32>
    %cst_12 = arith.constant 0.000000e+00 : f32
    %49 = vector.broadcast %cst_12 : f32 to vector<16x128xf32>
    %50 = arith.maximumf %48, %49 : vector<16x128xf32>
    %51 = arith.truncf %50 : vector<16x128xf32> to vector<16x128xbf16>
    %cst_13 = arith.constant 0.000000e+00 : bf16
    %52 = vector.broadcast %cst_13 : bf16 to vector<1x128xbf16>
    %53 = vector.extract_strided_slice %51 {offsets = [0, 0], sizes = [15, 128], strides = [1, 1]} : vector<16x128xbf16> to vector<15x128xbf16>
    %54 = tpu.concatenate %52, %53 in 0 : vector<1x128xbf16>, vector<15x128xbf16> -> vector<16x128xbf16>
    %55 = vector.extract_strided_slice %51 {offsets = [1, 0], sizes = [15, 128], strides = [1, 1]} : vector<16x128xbf16> to vector<15x128xbf16>
    %56 = tpu.concatenate %55, %52 in 0 : vector<15x128xbf16>, vector<1x128xbf16> -> vector<16x128xbf16>
    %c0_i32_14 = arith.constant 0 : i32
    %57 = vector.broadcast %c0_i32_14 : i32 to vector<16x1xi32>
    %58 = arith.cmpi eq, %25, %57 : vector<16x1xi32>
    %cst_15 = arith.constant 0.000000e+00 : bf16
    %59 = vector.broadcast %cst_15 : bf16 to vector<16x128xbf16>
    %60 = vector.shape_cast %58 : vector<16x1xi1> to vector<16x1xi1>
    %61 = vector.broadcast %60 : vector<16x1xi1> to vector<16x128xi1>
    %62 = arith.select %61, %59, %54 : vector<16x128xi1>, vector<16x128xbf16>
    %c7_i32_16 = arith.constant 7 : i32
    %63 = vector.broadcast %c7_i32_16 : i32 to vector<16x1xi32>
    %64 = arith.cmpi eq, %25, %63 : vector<16x1xi32>
    %cst_17 = arith.constant 0.000000e+00 : bf16
    %65 = vector.broadcast %cst_17 : bf16 to vector<16x128xbf16>
    %66 = vector.shape_cast %64 : vector<16x1xi1> to vector<16x1xi1>
    %67 = vector.broadcast %66 : vector<16x1xi1> to vector<16x128xi1>
    %68 = arith.select %67, %65, %56 : vector<16x128xi1>, vector<16x128xbf16>
    %69 = tpu.concatenate %62, %51, %68 in 1 : vector<16x128xbf16>, vector<16x128xbf16>, vector<16x128xbf16> -> vector<16x384xbf16>
    %c0_18 = arith.constant 0 : index
    %c0_19 = arith.constant 0 : index
    %70 = vector.load %arg4[%c0_18, %c0_19] : memref<384x128xbf16, #tpu.memory_space<vmem>>, vector<384x128xbf16>
    %cst_20 = arith.constant dense<0.000000e+00> : vector<16x128xf32>
    %71 = tpu.matmul %69, %70, %cst_20 {dimension_numbers = #tpu.dot_dimension_numbers<[1], [0], [0], [1], [0, 0, 1, 1], [], []>} : vector<16x384xbf16>, vector<384x128xbf16>, vector<16x128xf32> -> vector<16x128xf32>
    %c0_21 = arith.constant 0 : index
    %c0_22 = arith.constant 0 : index
    %72 = vector.load %arg5[%c0_21, %c0_22] : memref<1x128xf32, #tpu.memory_space<vmem>>, vector<1x128xf32>
    %73 = vector.broadcast %72 : vector<1x128xf32> to vector<16x128xf32>
    %74 = arith.addf %71, %73 : vector<16x128xf32>
    %cst_23 = arith.constant 0.000000e+00 : f32
    %75 = vector.broadcast %cst_23 : f32 to vector<16x128xf32>
    %76 = arith.maximumf %74, %75 : vector<16x128xf32>
    %c0_24 = arith.constant 0 : index
    %c0_25 = arith.constant 0 : index
    %77 = vector.load %arg6[%c0_24, %c0_25] : memref<16x128xf32, #tpu.memory_space<vmem>>, vector<16x128xf32>
    tpu.vector_store %arg6[%c0_24, %c0_25], %76 {strides = array<i32>} : memref<16x128xf32, #tpu.memory_space<vmem>>, vector<16x128xf32>,
    return
  }
  func.func @transform_0(%arg0: i32) -> (i32, i32) {
    %c0_i32 = arith.constant 0 : i32
    %c0_i32_0 = arith.constant 0 : i32
    %c0_i32_1 = arith.constant 0 : i32
    return %c0_i32, %c0_i32_0 : i32, i32
  }
  func.func @transform_1(%arg0: i32) -> (i32, i32) {
    %c0_i32 = arith.constant 0 : i32
    %c0_i32_0 = arith.constant 0 : i32
    %c0_i32_1 = arith.constant 0 : i32
    return %c0_i32, %c0_i32_0 : i32, i32
  }
  func.func @transform_2(%arg0: i32) -> (i32, i32) {
    %c0_i32 = arith.constant 0 : i32
    %c0_i32_0 = arith.constant 0 : i32
    %c0_i32_1 = arith.constant 0 : i32
    return %c0_i32, %c0_i32_0 : i32, i32
  }
  func.func @transform_3(%arg0: i32) -> (i32, i32) {
    %c0_i32 = arith.constant 0 : i32
    %c0_i32_0 = arith.constant 0 : i32
    %c0_i32_1 = arith.constant 0 : i32
    return %c0_i32, %c0_i32_0 : i32, i32
  }
  func.func @transform_4(%arg0: i32) -> (i32, i32) {
    %c0_i32 = arith.constant 0 : i32
    %c0_i32_0 = arith.constant 0 : i32
    %c0_i32_1 = arith.constant 0 : i32
    return %c0_i32, %c0_i32_0 : i32, i32
  }
  func.func @transform_5(%arg0: i32) -> (i32, i32) {
    %c0_i32 = arith.constant 0 : i32
    %c0_i32_0 = arith.constant 0 : i32
    %c0_i32_1 = arith.constant 0 : i32
    return %c0_i32, %c0_i32_0 : i32, i32
  }
}

</mosaic_0001>

<bundles_post_ra>
// kernel: down_forward.1
= control target key start
LH: loop header
LB: loop body
LE: loop exit
PB: predicated region body
PF: predicated region fallthrough
CT: control target
= control target key end

     0   :  { %s897_s12 = smov 120   ;;  %v41_v27 = vlaneseq  ;;  %v898_v36 = vmov 0   ;;  %vm81_vm8 = vcmask 1040384   ;;  %vm82_vm9 = vsmask.f32 256  ;;  %s1137_s0 = inlined_call_operand.vmem [shape: f32[16,256], index: 0, kind: input, shape index: {}]   ;;  %s1138_s1 = inlined_call_operand.vmem [shape: bf16[384,128], index: 1, kind: input, shape index: {}]   ;;  %s1139_s2 = inlined_call_operand.vmem [shape: f32[1,128], index: 2, kind: input, shape index: {}]   ;;  %s1140_s3 = inlined_call_operand.vmem [shape: bf16[384,128], index: 3, kind: input, shape index: {}]   ;;  %s1141_s4 = inlined_call_operand.vmem [shape: f32[1,128], index: 4, kind: input, shape index: {}]   ;;  %s1142_s5 = inlined_call_operand.vmem [shape: f32[16,128], index: 5, kind: output, shape index: {}]  }
   0x1   :  { %v23_v0 = vld [vmem:[%s1137_s0] sm:$0xff]  ;;  %v24_v1 = vld [vmem:[%s1137_s0 + $0x8] sm:$0xff]  ;;  %v25_v2 = vld [vmem:[%s1137_s0 + $0x10] sm:$0xff]  ;;  %v107_v53 = vunpack.c.l.b16 %v898_v36  ;;  %v108_v57 = vunpack.c.h.b16 %v898_v36  ;;  %vm88_vm10 = vcmask 1047552   ;;  %vm89_vm11 = vsmask.f32 7424 }
   0x2   :  { %v26_v3 = vld [vmem:[%s1137_s0 + $0x18] sm:$0xff]  ;;  %v941_v4 = vmax.f32 %v23_v0, %v24_v1  ;;  %v854_v9 = vld [vmem:[%s1138_s1 + $0x70] sm:$0xff]  ;;  %v853_v13 = vld [vmem:[%s1138_s1 + $0x68] sm:$0xff]  ;;  %v42_v32 = vshrl.u32 %v41_v27, 7 }
   0x3   :  { %v855_v5 = vld [vmem:[%s1138_s1 + $0x78] sm:$0xff]  ;;  %v946_v6 = vmax.f32 %v25_v2, %v26_v3  ;;  %v846_v11 = vld [vmem:[%s1138_s1 + $0x30] sm:$0xff]  ;;  %v845_v14 = vld [vmem:[%s1138_s1 + $0x28] sm:$0xff] }
   0x4   :  { %v847_v7 = vld [vmem:[%s1138_s1 + $0x38] sm:$0xff]  ;;  %345 = vmatpush.bf16.msra.mxu1 %v855_v5  ;;  %v862_v12 = vld [vmem:[%s1138_s1 + $0xb0] sm:$0xff]  ;;  %v861_v15 = vld [vmem:[%s1138_s1 + $0xa8] sm:$0xff]  ;;  %v43_v33 = vadd.s32 8, %v42_v32  ;;  %v48_v34 = vand.u32 7, %v42_v32 }
   0x5   :  { %v863_v8 = vld [vmem:[%s1138_s1 + $0xb8] sm:$0xff]  ;;  %v890_v10 = vpack.i.bf16 %v946_v6, %v941_v4  ;;  %331 = vmatpush.bf16.msra.mxu0 %v847_v7  ;;  %v852_v16 = vld [vmem:[%s1138_s1 + $0x60] sm:$0xff]  ;;  %v850_v20 = vld [vmem:[%s1138_s1 + $0x50] sm:$0xff] }
   0x6   :  { %359 = vmatpush.bf16.msra.mxu2 %v863_v8  ;;  %v844_v17 = vld [vmem:[%s1138_s1 + $0x20] sm:$0xff]  ;;  %v851_v19 = vld [vmem:[%s1138_s1 + $0x58] sm:$0xff]  ;;  %v849_v22 = vld [vmem:[%s1138_s1 + $0x48] sm:$0xff]  ;;  %v55_v35 = vand.u32 7, %v43_v33  ;;  %vm92_vm0 = vcmp.eq.s32.totalorder %v48_v34, 0  ;;  %vm113_vm2 = vcmp.eq.s32.totalorder %v48_v34, 7 }
   0x7   :  { %891 = vrot.lane.b32.xlu0 %v890_v10, %s897_s12  ;;  %v860_v18 = vld [vmem:[%s1138_s1 + $0xa0] sm:$0xff]  ;;  %v843_v21 = vld [vmem:[%s1138_s1 + $0x18] sm:$0xff]  ;;  %v842_v24 = vld [vmem:[%s1138_s1 + $0x10] sm:$0xff] }
   0x8   :  { %346 = vmatpush.bf16.msra.mxu1 %v854_v9  ;;  %v859_v23 = vld [vmem:[%s1138_s1 + $0x98] sm:$0xff]  ;;  %v848_v25 = vld [vmem:[%s1138_s1 + $0x40] sm:$0xff]  ;;  %v858_v26 = vld [vmem:[%s1138_s1 + $0x90] sm:$0xff]  ;;  %vm93_vm1 = vcmp.eq.s32.totalorder %v55_v35, 0  ;;  %vm114_vm4 = vcmp.eq.s32.totalorder %v55_v35, 7 }
   0x9   :  { %332 = vmatpush.bf16.msra.mxu0 %v846_v11  ;;  %v841_v28 = vld [vmem:[%s1138_s1 + $0x8] sm:$0xff]  ;;  %v840_v30 = vld [vmem:[%s1138_s1] sm:$0xff]  ;;  %vm98_vm3 = vmpackc.low %vm92_vm0, %vm92_vm0 }
   0xa   :  { %360 = vmatpush.bf16.msra.mxu2 %v862_v12  ;;  %v857_v29 = vld [vmem:[%s1138_s1 + $0x88] sm:$0xff]  ;;  %v856_v31 = vld [vmem:[%s1138_s1 + $0x80] sm:$0xff]  ;;  %vm99_vm5 = vmpackc.low %vm93_vm1, %vm93_vm1  ;;  %v100_v37 = vsel %vm98_vm3, 65537, %v898_v36 }
   0xb   :  { %vm119_vm6 = vmpackc.low %vm113_vm2, %vm113_vm2  ;;  %v101_v39 = vsel %vm99_vm5, 65537, %v898_v36  ;;  %v102_v44 = vunpack.c.l.b16 %v100_v37  ;;  %v879_v11 = vld [vmem:[%s1140_s3 + $0x78] sm:$0xff]  ;;  %v878_v12 = vld [vmem:[%s1140_s3 + $0x70] sm:$0xff] }
   0xc   :  { %347 = vmatpush.bf16.msra.mxu1 %v853_v13  ;;  %vm120_vm7 = vmpackc.low %vm114_vm4, %vm114_vm4  ;;  %v121_v42 = vsel %vm119_vm6, 65537, %v898_v36  ;;  %v103_v47 = vunpack.c.l.b16 %v101_v39  ;;  %v871_v13 = vld [vmem:[%s1140_s3 + $0x38] sm:$0xff]  ;;  %v881_v32 = vld [vmem:[%s1140_s3 + $0x88] sm:$0xff] }
   0xd   :  { %333 = vmatpush.bf16.msra.mxu0 %v845_v14  ;;  %v122_v43 = vsel %vm120_vm7, 65537, %v898_v36  ;;  %v123_v48 = vunpack.c.l.b16 %v121_v42  ;;  %v644_v52 = vunpack.i.l.s16 %v102_v44  ;;  %vm1021_vm14 = vmand %vm81_vm8, %vm82_vm9  ;;  %v877_v14 = vld [vmem:[%s1140_s3 + $0x68] sm:$0xff]  ;;  %594 = vmatpush.bf16.msra.mxu3 %v871_v13  ;;  %v883_v27 = vld [vmem:[%s1140_s3 + $0x98] sm:$0xff] }
   0xe   :  { %361 = vmatpush.bf16.msra.mxu2 %v861_v15  ;;  %v124_v49 = vunpack.c.l.b16 %v122_v43  ;;  %v645_v56 = vunpack.i.l.s16 %v103_v47  ;;  %vm1025_vm1 = vmand %vm88_vm10, %vm89_vm11  ;;  %v887_v15 = vld [vmem:[%s1140_s3 + $0xb8] sm:$0xff]  ;;  %v864_v33 = vld [vmem:[%s1140_s3] sm:$0xff] }
   0xf   :  { %v646_v58 = vunpack.i.l.s16 %v123_v48  ;;  %vm109_vm12 = vcmp.ne.s32.totalorder %v644_v52, %v107_v53  ;;  %v880_v34 = vld [vmem:[%s1140_s3 + $0x80] sm:$0xff] }
  0x10   :  { %348 = vmatpush.bf16.msra.mxu1 %v852_v16  ;;  %v647_v59 = vunpack.i.l.s16 %v124_v49  ;;  %vm110_vm13 = vcmp.ne.s32.totalorder %v645_v56, %v108_v57  ;;  %v870_v16 = vld [vmem:[%s1140_s3 + $0x30] sm:$0xff]  ;;  %v895_v35 = vld [vmem:[%s1139_s2] ss:$0 sm:$0xff] }
  0x11   :  { %334 = vmatpush.bf16.msra.mxu0 %v844_v17  ;;  %vm130_vm15 = vcmp.ne.s32.totalorder %v646_v58, %v107_v53  ;;  %vm1029_vm2 = vmpackc.low %vm110_vm13, %vm109_vm12  ;;  %v876_v17 = vld [vmem:[%s1140_s3 + $0x60] sm:$0xff]  ;;  %595 = vmatpush.bf16.msra.mxu3 %v870_v16 }
  0x12   :  { %362 = vmatpush.bf16.msra.mxu2 %v860_v18  ;;  %vm131_vm0 = vcmp.ne.s32.totalorder %v647_v59, %v108_v57  ;;  %v886_v18 = vld [vmem:[%s1140_s3 + $0xb0] sm:$0xff] }
  0x13   :  { %vm1033_vm3 = vmpackc.low %vm131_vm0, %vm130_vm15 }
  0x14   :  { %349 = vmatpush.bf16.msra.mxu1 %v851_v19  ;;  %v869_v19 = vld [vmem:[%s1140_s3 + $0x28] sm:$0xff] }
  0x15   :  { %335 = vmatpush.bf16.msra.mxu0 %v843_v21  ;;  %v885_v21 = vld [vmem:[%s1140_s3 + $0xa8] sm:$0xff]  ;;  %596 = vmatpush.bf16.msra.mxu3 %v869_v19 }
  0x16   :  { %363 = vmatpush.bf16.msra.mxu2 %v859_v23  ;;  %v874_v23 = vld [vmem:[%s1140_s3 + $0x50] sm:$0xff] }
  0x18   :  { %350 = vmatpush.bf16.msra.mxu1 %v850_v20  ;;  %v875_v20 = vld [vmem:[%s1140_s3 + $0x58] sm:$0xff] }
  0x19   :  { %336 = vmatpush.bf16.msra.mxu0 %v842_v24  ;;  %v884_v24 = vld [vmem:[%s1140_s3 + $0xa0] sm:$0xff] }
  0x1a   :  { %364 = vmatpush.bf16.msra.mxu2 %v858_v26  ;;  %v873_v26 = vld [vmem:[%s1140_s3 + $0x48] sm:$0xff] }
  0x1c   :  { %351 = vmatpush.bf16.msra.mxu1 %v849_v22  ;;  %v868_v22 = vld [vmem:[%s1140_s3 + $0x20] sm:$0xff] }
  0x1d   :  { %337 = vmatpush.bf16.msra.mxu0 %v841_v28  ;;  %597 = vmatpush.bf16.msra.mxu3 %v868_v22  ;;  %v866_v28 = vld [vmem:[%s1140_s3 + $0x10] sm:$0xff] }
  0x1e   :  { %365 = vmatpush.bf16.msra.mxu2 %v857_v29  ;;  %v872_v29 = vld [vmem:[%s1140_s3 + $0x40] sm:$0xff] }
  0x20   :  { %352 = vmatpush.bf16.msra.mxu1 %v848_v25  ;;  %v867_v25 = vld [vmem:[%s1140_s3 + $0x18] sm:$0xff] }
  0x21   :  { %338 = vmatpush.bf16.msra.mxu0 %v840_v30  ;;  %598 = vmatpush.bf16.msra.mxu3 %v867_v25  ;;  %v882_v30 = vld [vmem:[%s1140_s3 + $0x90] sm:$0xff] }
  0x22   :  { %366 = vmatpush.bf16.msra.mxu2 %v856_v31  ;;  %v865_v31 = vld [vmem:[%s1140_s3 + $0x8] sm:$0xff] }
  0x24   :  { %622 = vmatpush.bf16.msrb.mxu1 %v887_v15 }
  0x25   :  { %608 = vmatpush.bf16.msrb.mxu0 %v879_v11  ;;  %599 = vmatpush.bf16.msra.mxu3 %v866_v28 }
  0x28   :  { %623 = vmatpush.bf16.msrb.mxu1 %v886_v18 }
  0x29   :  { %609 = vmatpush.bf16.msrb.mxu0 %v878_v12  ;;  %600 = vmatpush.bf16.msra.mxu3 %v865_v31 }
  0x2c   :  { %624 = vmatpush.bf16.msrb.mxu1 %v885_v21 }
  0x2d   :  { %610 = vmatpush.bf16.msrb.mxu0 %v877_v14  ;;  %601 = vmatpush.bf16.msra.mxu3 %v864_v33 }
  0x30   :  { %625 = vmatpush.bf16.msrb.mxu1 %v884_v24 }
  0x31   :  { %611 = vmatpush.bf16.msrb.mxu0 %v876_v17 }
  0x34   :  { %626 = vmatpush.bf16.msrb.mxu1 %v883_v27 }
  0x35   :  { %612 = vmatpush.bf16.msrb.mxu0 %v875_v20 }
  0x38   :  { %627 = vmatpush.bf16.msrb.mxu1 %v882_v30 }
  0x39   :  { %613 = vmatpush.bf16.msrb.mxu0 %v874_v23 }
  0x3c   :  { %628 = vmatpush.bf16.msrb.mxu1 %v881_v32 }
  0x3d   :  { %614 = vmatpush.bf16.msrb.mxu0 %v873_v26 }
  0x40   :  { %629 = vmatpush.bf16.msrb.mxu1 %v880_v34 }
  0x41   :  { %615 = vmatpush.bf16.msrb.mxu0 %v872_v29 }
  0x79   :  { %v892_v38 = vpop.permute.xlu0 %891 }
  0x7a   :  { %v894_v40 = vunpack.i.h.bf16 %v892_v38  ;;  %v893_v41 = vunpack.i.l.bf16 %v892_v38 }
  0x7c   :  { %v38_v45 = vmax.f32 %v946_v6, %v894_v40  ;;  %v37_v46 = vmax.f32 %v941_v4, %v893_v41 }
  0x7e   :  { %v40_v50 = vpack.c.bf16 %v38_v45, %v38_v45  ;;  %v39_v51 = vpack.c.bf16 %v37_v46, %v37_v46 }
  0x80   :  { %v71_v54 = vunpack.c.l.b16 %v40_v50  ;;  %v70_v55 = vunpack.c.l.b16 %v39_v51 }
  0x82   :  { %v72_v60 = vpack.c.b16 %v71_v54, %v70_v55 }
  0x84   :  { %353 = vmatmul.bf16.vlgmr.msra.gmra.mxu1 %v72_v60  ;;  %v74_v61 = vshrl.u32 %v72_v60, 16  ;;  %v77_v62 = vshll.u32 %v72_v60, 16 }
  0x86   :  { %v76_v0 = vrot.slane %v74_v61, 7  ;;  %v85_v1 = vrot.slane %v77_v62, 1 }
  0x88   :  { %v79_v4 = vor.u32 %v77_v62, %v76_v0  ;;  %v86_v5 = vor.u32 %v85_v1, %v74_v61 }
  0x8a   :  { %v84_v7 = vsel %vm1021_vm14, 0, %v79_v4  ;;  %v91_v8 = vsel %vm1025_vm1, %v86_v5, 0  ;;  %v896_v4 = vld [vmem:[%s1141_s4] ss:$0 sm:$0xff] }
  0x8b   :  { %v112_v9 = vsel %vm1029_vm2, 0, %v84_v7  ;;  %v133_v10 = vsel %vm1033_vm3, 0, %v91_v8 }
  0x8c   :  { %339 = vmatmul.bf16.vlgmr.msra.gmra.mxu0 %v112_v9  ;;  %367 = vmatmul.bf16.vlgmr.msra.gmra.mxu2 %v133_v10 }
 0x101   :  { %v354_v37 = vpop.f32.mrf.mxu1 }
 0x109   :  { %v340_v36 = vpop.f32.mrf.mxu0  ;;  %v356_v44 = vpop.f32.mrf.mxu1 }
 0x10a   :  { %v341_v38 = vadd.f32 %v895_v35, %v340_v36 }
 0x10c   :  { %v355_v40 = vadd.f32 %v354_v37, %v341_v38 }
 0x10f   :  { %v368_v39 = vpop.f32.mrf.mxu2 }
 0x110   :  { %v369_v42 = vadd.f32 %v368_v39, %v355_v40 }
 0x111   :  { %v342_v41 = vpop.f32.mrf.mxu0 }
 0x112   :  { %v343_v43 = vadd.f32 %v895_v35, %v342_v41  ;;  %v373_v45 = vmax.f32 %v369_v42, 0.0 }
 0x114   :  { %v357_v46 = vadd.f32 %v356_v44, %v343_v43  ;;  %v375_v49 = vpack.c.bf16 %v373_v45, %v373_v45 }
 0x116   :  { %v379_v52 = vunpack.c.l.b16 %v375_v49 }
 0x117   :  { %v370_v47 = vpop.f32.mrf.mxu2 }
 0x118   :  { %v371_v48 = vadd.f32 %v370_v47, %v357_v46 }
 0x11a   :  { %v374_v50 = vmax.f32 %v371_v48, 0.0 }
 0x11c   :  { %v376_v51 = vpack.c.bf16 %v374_v50, %v374_v50 }
 0x11e   :  { %v380_v53 = vunpack.c.l.b16 %v376_v51 }
 0x120   :  { %v381_v54 = vpack.c.b16 %v380_v53, %v379_v52 }
 0x122   :  { %616 = vmatmul.bf16.vlgmr.msrb.gmra.mxu0 %v381_v54  ;;  %v383_v55 = vshrl.u32 %v381_v54, 16  ;;  %v386_v56 = vshll.u32 %v381_v54, 16 }
 0x124   :  { %v385_v57 = vrot.slane %v383_v55, 7  ;;  %v391_v58 = vrot.slane %v386_v56, 1 }
 0x126   :  { %v388_v59 = vor.u32 %v386_v56, %v385_v57  ;;  %v392_v60 = vor.u32 %v391_v58, %v383_v55 }
 0x128   :  { %v390_v61 = vsel %vm1021_vm14, 0, %v388_v59  ;;  %v394_v62 = vsel %vm1025_vm1, %v392_v60, 0 }
 0x129   :  { %v395_v0 = vsel %vm1029_vm2, 0, %v390_v61  ;;  %v396_v1 = vsel %vm1033_vm3, 0, %v394_v62 }
 0x12a   :  { %602 = vmatmul.bf16.vlgmr.msra.gmra.mxu3 %v395_v0  ;;  %630 = vmatmul.bf16.vlgmr.msrb.gmra.mxu1 %v396_v1 }
 0x19f   :  { %v617_v5 = vpop.f32.mrf.mxu0 }
 0x1a7   :  { %v631_v63 = vpop.f32.mrf.mxu1  ;;  %v619_v6 = vpop.f32.mrf.mxu0 }
 0x1ad   :  { %v603_v7 = vpop.f32.mrf.mxu3 }
 0x1ae   :  { %v604_v8 = vadd.f32 %v896_v4, %v603_v7 }
 0x1af   :  { %v633_v13 = vpop.f32.mrf.mxu1 }
 0x1b0   :  { %v618_v9 = vadd.f32 %v617_v5, %v604_v8 }
 0x1b2   :  { %v632_v10 = vadd.f32 %v631_v63, %v618_v9 }
 0x1b4   :  { %v636_v2 = vmax.f32 %v632_v10, 0.0 }
 0x1b5   :  { %v605_v11 = vpop.f32.mrf.mxu3 }
 0x1b6   :  { %638 = vst [vmem:[%s1142_s5] sm:$0xff] %v636_v2  ;;  %v606_v3 = vadd.f32 %v896_v4, %v605_v11 }
 0x1b8   :  { %v620_v12 = vadd.f32 %v619_v6, %v606_v3 }
 0x1ba   :  { %v634_v14 = vadd.f32 %v633_v13, %v620_v12 }
 0x1bc   :  { %v637_v15 = vmax.f32 %v634_v14, 0.0 }
 0x1be   :  { %639 = vst [vmem:[%s1142_s5 + $0x8] sm:$0xff] %v637_v15 }

</bundles_post_ra>
